<compile_context>
chip_gen: v5e
topology: v5e:2x2
jax: 0.10.0
libtpu: 0.0.40
codegen_flags: <defaults>
</compile_context>

<pallas_src>
import functools

import jax
import jax.numpy as jnp
from jax import lax
from jax.experimental import pallas as pl
from jax.experimental.pallas import tpu as pltpu


def bcm_kernel(w_ref, xi_ref, xj_ref, y_ref, w_out_ref, acc_ref, *, lr, theta):
    # Grid axes: (i over D_in tiles, j over D_out tiles, k over batch tiles).
    k = pl.program_id(2)

    @pl.when(k == 0)
    def _():
        # Seed the resident f32 accumulator with the current weight tile.
        acc_ref[...] = w_ref[...].astype(jnp.float32)

    xi = xi_ref[...]   # (TB, TM) pre-synaptic activity for the rows of W
    xj = xj_ref[...]   # (TB, TN) pre-synaptic activity aligned with y
    y = y_ref[...]     # (TB, TN) post-synaptic activity

    # BCM post-synaptic factor, exactly as written in the PyTorch module:
    #   y * (x * y - theta * y)
    # Computed in the native operand dtype (no f32 pre-cast of MXU operands).
    # lr is folded into this small (TB, TN) operand rather than scaling the
    # full (TM, TN) weight tile afterwards.
    post = y * (xj * y - jnp.asarray(theta, y.dtype) * y)
    post = (post * jnp.asarray(lr, post.dtype)).astype(xi.dtype)

    # x.T @ post  ==  contract over the batch axis; f32 accumulate on the MXU.
    acc_ref[...] += lax.dot_general(
        xi, post,
        dimension_numbers=(((0,), (0,)), ((), ())),
        preferred_element_type=jnp.float32,
    )

    @pl.when(k == pl.num_programs(2) - 1)
    def _():
        w_out_ref[...] = acc_ref[...].astype(w_out_ref.dtype)


def _pick_dim_tile(dim, target, align=128):
    """Full dim if it fits, else the largest lane/sublane-aligned tile <= target."""
    if dim <= target:
        return dim
    return max(align, (target // align) * align)


def _pick_batch_tile(batch, target=512):
    """Batch tile that divides the batch exactly (avoids padded-batch garbage
    contaminating the reduction); falls back to the whole batch."""
    if batch <= target:
        return batch
    for tb in range(target, 7, -8):
        if batch % tb == 0:
            return tb
    return batch


def bcm_update(weights, x, y, lr=0.001, theta=0.5,
               tile_m=512, tile_n=512, batch_tile=512):
    """Returns weights + lr * x.T @ (y * (x*y - theta*y)), updated in place
    via input/output aliasing of the weights buffer."""
    d_in, d_out = weights.shape
    b = x.shape[0]
    assert x.shape == (b, d_in)
    assert y.shape == (b, d_out)
    # The module's element-wise `x * y` requires matching feature dims.
    assert d_in == d_out, "BcmLearning requires input_dim == output_dim"

    tm = _pick_dim_tile(d_in, tile_m)    # rows of W (and lane dim of the xi tile)
    tn = _pick_dim_tile(d_out, tile_n)   # lane-dense output dim (multiple of 128)
    tb = _pick_batch_tile(b, batch_tile)

    grid = (pl.cdiv(d_in, tm), pl.cdiv(d_out, tn), pl.cdiv(b, tb))

    kernel = functools.partial(bcm_kernel, lr=float(lr), theta=float(theta))

    w_bytes = jnp.dtype(weights.dtype).itemsize
    a_bytes = jnp.dtype(x.dtype).itemsize
    cost = pl.CostEstimate(
        flops=2 * b * d_in * d_out + 4 * b * d_out,
        transcendentals=0,
        bytes_accessed=2 * d_in * d_out * w_bytes
        + b * (d_in + 2 * d_out) * a_bytes,
    )

    grid_spec = pltpu.PrefetchScalarGridSpec(
        num_scalar_prefetch=0,
        grid=grid,
        in_specs=[
            pl.BlockSpec((tm, tn), lambda i, j, k: (i, j)),   # weights tile
            pl.BlockSpec((tb, tm), lambda i, j, k: (k, i)),   # x tile for x.T rows
            pl.BlockSpec((tb, tn), lambda i, j, k: (k, j)),   # x tile aligned w/ y
            pl.BlockSpec((tb, tn), lambda i, j, k: (k, j)),   # y tile
        ],
        out_specs=pl.BlockSpec((tm, tn), lambda i, j, k: (i, j)),
        scratch_shapes=[pltpu.VMEM((tm, tn), jnp.float32)],   # f32 accumulator
    )

    return pl.pallas_call(
        kernel,
        out_shape=jax.ShapeDtypeStruct((d_in, d_out), weights.dtype),
        grid_spec=grid_spec,
        compiler_params=pltpu.CompilerParams(
            dimension_semantics=("parallel", "parallel", "arbitrary")),
        cost_estimate=cost,
        # Alias weights (input 0) with the output: in-place-style update,
        # mirroring `self.weights.data += delta_w`.
        input_output_aliases={0: 0},
    )(weights, x, x, y)


if __name__ == "__main__":
    # Small shapes consistent with the module's forward:
    #   x: [batch, input_dim], y: [batch, output_dim], input_dim == output_dim.
    batch, dim = 16, 256
    lr, theta = 0.001, 0.5

    key = jax.random.PRNGKey(0)
    k_w, k_x, k_y = jax.random.split(key, 3)

    # Deterministic parameter init: randn(input_dim, output_dim) * 0.01
    weights = jax.random.normal(k_w, (dim, dim), jnp.float32) * 0.01
    x = jax.random.normal(k_x, (batch, dim), jnp.float32)
    y = jax.random.normal(k_y, (batch, dim), jnp.float32)

    # Reference (computed before the call since the weights buffer is aliased).
    post_ref = y * (x * y - theta * y)
    ref = weights + lr * (x.T @ post_ref)

    # Use small tiles here so the multi-tile grid + batch-reduction path is
    # exercised even at these small test shapes (grid = (2, 2, 2)).
    new_w = bcm_update(weights, x, y, lr=lr, theta=theta,
                       tile_m=128, tile_n=128, batch_tile=8)
    new_w = jax.block_until_ready(new_w)

    assert new_w.shape == (dim, dim)
    assert jnp.allclose(new_w, ref, atol=1e-5, rtol=1e-5), "mismatch vs reference"

    print("KERNEL_OK")
</pallas_src>

<mosaic_0001>
module attributes {stable_mosaic.version = 11 : i64} {
  func.func @bcm_kernel(%arg0: i32, %arg1: i32, %arg2: i32, %arg3: memref<128x128xf32, #tpu.memory_space<vmem>>, %arg4: memref<8x128xf32, #tpu.memory_space<vmem>>, %arg5: memref<8x128xf32, #tpu.memory_space<vmem>>, %arg6: memref<8x128xf32, #tpu.memory_space<vmem>>, %arg7: memref<128x128xf32, #tpu.memory_space<vmem>>, %arg8: memref<128x128xf32, #tpu.memory_space<vmem>>) attributes {dimension_semantics = [#tpu.dimension_semantics<parallel>, #tpu.dimension_semantics<parallel>, #tpu.dimension_semantics<arbitrary>], iteration_bounds = array<i64: 2, 2, 2>, scalar_prefetch = 0 : i64, scratch_operands = 1 : i64, tpu.core_type = #tpu.core_type<tc>, window_params = [{transform_indices = @transform_0, window_bounds = array<i64: 128, 128>}, {transform_indices = @transform_1, window_bounds = array<i64: 8, 128>}, {transform_indices = @transform_2, window_bounds = array<i64: 8, 128>}, {transform_indices = @transform_3, window_bounds = array<i64: 8, 128>}, {transform_indices = @transform_4, window_bounds = array<i64: 128, 128>}]} {
    %c0_i32 = arith.constant 0 : i32
    %0 = arith.cmpi eq, %arg2, %c0_i32 : i32
    %1 = arith.extui %0 : i1 to i32
    %c0_i32_0 = arith.constant 0 : i32
    %2 = arith.cmpi ne, %1, %c0_i32_0 : i32
    scf.if %2 {
      %c0_13 = arith.constant 0 : index
      %c0_14 = arith.constant 0 : index
      %20 = vector.load %arg3[%c0_13, %c0_14] : memref<128x128xf32, #tpu.memory_space<vmem>>, vector<128x128xf32>
      %c0_15 = arith.constant 0 : index
      %c0_16 = arith.constant 0 : index
      %21 = vector.load %arg8[%c0_15, %c0_16] : memref<128x128xf32, #tpu.memory_space<vmem>>, vector<128x128xf32>
      tpu.vector_store %arg8[%c0_15, %c0_16], %20 {strides = array<i32>} : memref<128x128xf32, #tpu.memory_space<vmem>>, vector<128x128xf32>,
    } else {
    }
    %c0 = arith.constant 0 : index
    %c0_1 = arith.constant 0 : index
    %3 = vector.load %arg4[%c0, %c0_1] : memref<8x128xf32, #tpu.memory_space<vmem>>, vector<8x128xf32>
    %c0_2 = arith.constant 0 : index
    %c0_3 = arith.constant 0 : index
    %4 = vector.load %arg5[%c0_2, %c0_3] : memref<8x128xf32, #tpu.memory_space<vmem>>, vector<8x128xf32>
    %c0_4 = arith.constant 0 : index
    %c0_5 = arith.constant 0 : index
    %5 = vector.load %arg6[%c0_4, %c0_5] : memref<8x128xf32, #tpu.memory_space<vmem>>, vector<8x128xf32>
    %6 = arith.mulf %4, %5 : vector<8x128xf32>
    %cst = arith.constant 5.000000e-01 : f32
    %7 = vector.broadcast %cst : f32 to vector<8x128xf32>
    %8 = arith.mulf %7, %5 : vector<8x128xf32>
    %9 = arith.subf %6, %8 : vector<8x128xf32>
    %10 = arith.mulf %5, %9 : vector<8x128xf32>
    %cst_6 = arith.constant 1.000000e-03 : f32
    %11 = vector.broadcast %cst_6 : f32 to vector<8x128xf32>
    %12 = arith.mulf %10, %11 : vector<8x128xf32>
    %c0_7 = arith.constant 0 : index
    %c0_8 = arith.constant 0 : index
    %13 = vector.load %arg8[%c0_7, %c0_8] : memref<128x128xf32, #tpu.memory_space<vmem>>, vector<128x128xf32>
    %cst_9 = arith.constant dense<0.000000e+00> : vector<128x128xf32>
    %14 = tpu.matmul %3, %12, %cst_9 {dimension_numbers = #tpu.dot_dimension_numbers<[0], [0], [1], [1], [0, 1, 1, 1], [], []>} : vector<8x128xf32>, vector<8x128xf32>, vector<128x128xf32> -> vector<128x128xf32>
    %15 = arith.addf %13, %14 : vector<128x128xf32>
    %c0_10 = arith.constant 0 : index
    %c0_11 = arith.constant 0 : index
    %16 = vector.load %arg8[%c0_10, %c0_11] : memref<128x128xf32, #tpu.memory_space<vmem>>, vector<128x128xf32>
    tpu.vector_store %arg8[%c0_10, %c0_11], %15 {strides = array<i32>} : memref<128x128xf32, #tpu.memory_space<vmem>>, vector<128x128xf32>,
    %c1_i32 = arith.constant 1 : i32
    %17 = arith.cmpi eq, %arg2, %c1_i32 : i32
    %18 = arith.extui %17 : i1 to i32
    %c0_i32_12 = arith.constant 0 : i32
    %19 = arith.cmpi ne, %18, %c0_i32_12 : i32
    scf.if %19 {
      %c0_13 = arith.constant 0 : index
      %c0_14 = arith.constant 0 : index
      %20 = vector.load %arg8[%c0_13, %c0_14] : memref<128x128xf32, #tpu.memory_space<vmem>>, vector<128x128xf32>
      %c0_15 = arith.constant 0 : index
      %c0_16 = arith.constant 0 : index
      %21 = vector.load %arg7[%c0_15, %c0_16] : memref<128x128xf32, #tpu.memory_space<vmem>>, vector<128x128xf32>
      tpu.vector_store %arg7[%c0_15, %c0_16], %20 {strides = array<i32>} : memref<128x128xf32, #tpu.memory_space<vmem>>, vector<128x128xf32>,
    } else {
    }
    return
  }
  func.func @transform_0(%arg0: i32, %arg1: i32, %arg2: i32) -> (i32, i32) {
    %c0_i32 = arith.constant 0 : i32
    return %arg0, %arg1 : i32, i32
  }
  func.func @transform_1(%arg0: i32, %arg1: i32, %arg2: i32) -> (i32, i32) {
    %c0_i32 = arith.constant 0 : i32
    return %arg2, %arg0 : i32, i32
  }
  func.func @transform_2(%arg0: i32, %arg1: i32, %arg2: i32) -> (i32, i32) {
    %c0_i32 = arith.constant 0 : i32
    return %arg2, %arg1 : i32, i32
  }
  func.func @transform_3(%arg0: i32, %arg1: i32, %arg2: i32) -> (i32, i32) {
    %c0_i32 = arith.constant 0 : i32
    return %arg2, %arg1 : i32, i32
  }
  func.func @transform_4(%arg0: i32, %arg1: i32, %arg2: i32) -> (i32, i32) {
    %c0_i32 = arith.constant 0 : i32
    return %arg0, %arg1 : i32, i32
  }
}

</mosaic_0001>

<bundles_post_ra>
// kernel: tpu_custom_call.1
= control target key start
LH: loop header
LB: loop body
LE: loop exit
PB: predicated region body
PF: predicated region fallthrough
CT: control target
= control target key end

     0   :  { %s1357_s0 = inlined_call_operand.hbm [shape: f32[256,256], index: 0, kind: input, shape index: {}, may-alias: {0,4}]   ;;  %s1358_s1 = inlined_call_operand.vmem [shape: f32[16,256], index: 1, kind: input, shape index: {}]   ;;  %s1359_s2 = inlined_call_operand.vmem [shape: f32[16,256], index: 2, kind: input, shape index: {}]   ;;  %s1360_s3 = inlined_call_operand.vmem [shape: f32[16,256], index: 3, kind: input, shape index: {}]   ;;  %s1361_s4 = inlined_call_operand.hbm [shape: f32[256,256], index: 4, kind: output, shape index: {}, may-alias: {0,4}]  }
   0x1   :  { %1369 = sst [smem:[#allocation16_spill]] %s1357_s0 }
   0x2   :  { %1370 = sst [smem:[#allocation17_spill]] %s1361_s4 }
   0x3   :  { %9 = vsyncpa [#allocation4], 0 }
   0x4   :  { %11 = vsyncpa [#allocation4 + $0x1], 0 }
   0x5   :  { %12 = vsyncpa [#allocation5], 0 }
   0x6   :  { %14 = vsyncpa [#allocation5 + $0x1], 0  ;;  %s1102_s15 = smov 0   ;;  %s1104_s16 = smov 0  }
   0x7   :  { %s1106_s17 = smov 0   ;;  %s1108_s18 = smov 0  }
   0x8   :  { %s1110_s19 = smov 0   ;;  %s1112_s20 = smov 0  }
   0x9   :  { %s1114_s21 = smov 0   ;;  %s1116_s22 = smov 0  }
   0xa   :  { %s1118_s23 = smov 0   ;;  %s1120_s24 = smov 0  }
   0xb LB: > { %1371 = sst [smem:[#allocation9_spill]] %s1033_s15  ;;  %s778_s25 = sadd.s32 4294967295, %s1069_s24   ;;  %s1069_s24 = sphi %s1120_s24, %s20_s24   ;;  %s1065_s23 = sphi %s1118_s23, %s1390_s23   ;;  %s1061_s22 = sphi %s1116_s22, %s1395_s22   ;;  %s1057_s21 = sphi %s1114_s21, %s1388_s21   ;;  %s1053_s20 = sphi %s1112_s20, %s1387_s20   ;;  %s1049_s19 = sphi %s1110_s19, %s1394_s19   ;;  %s1045_s18 = sphi %s1108_s18, %s1386_s18   ;;  %s1041_s17 = sphi %s1106_s17, %s1393_s17   ;;  %s1037_s16 = sphi %s1104_s16, %s1392_s16   ;;  %s1033_s15 = sphi %s1102_s15, %s1391_s15  }
   0xc   : > { %1372 = sst [smem:[#allocation10_spill]] %s1057_s21  ;;  %s779_s26 = sadd.s32 4294967294, %s1069_s24  }
   0xd   : > { %1373 = sst [smem:[#allocation11_spill]] %s1065_s23  ;;  %s32_s27 = sadd.s32 1, %s1057_s21 }
   0xe   : > { %s35_s28 = sadd.s32 1, %s1061_s22  ;;  %p33_p0 = scmp.ge.s32.totalorder %s32_s27, 2 }
   0xf   : > { %s39_s29 = sadd.s32 1, %s1065_s23  ;;  %s48_s30 = sadd.s32 1, %s1041_s17 }
  0x10   : > { %p55_p1 = scmp.ne.s32.totalorder %s1041_s17, %s1037_s16  ;;  %s1397_s27 = smov (%p33_p0, %s32_s27), 0 }
  0x11   : > { %1374 = sst [smem:[#allocation12_spill]] %s1397_s27  ;;  %s1399_s28 = smov (!%p33_p0, %s35_s28), %s1061_s22 }
  0x12   : > { %p56_p2 = scmp.eq.s32.totalorder %s1069_s24, 0  ;;  %p61_p3 = scmp.ne.s32.totalorder %s1037_s16, %s1033_s15 }
  0x13   : > { %p37_p4 = scmp.ge.s32.totalorder %s1399_s28, 2  ;;  %p62_p5 = scmp.eq.s32.totalorder %s778_s25, 0 }
  0x14   : > { %p1169_p6 = por %p56_p2, %p55_p1  ;;  %p171_p7 = scmp.eq.s32.totalorder %s778_s25, 7 }
  0x15   : > { %s1401_s28 = smov (%p37_p4, %s1399_s28), 0  ;;  %s1403_s29 = smov (!%p37_p4, %s39_s29), %s1065_s23 }
  0x16   : > { %1376 = sst [smem:[#allocation13_spill]] %s1401_s28  ;;  %s44_s6 = ssub.s32 %s1061_s22, %s1401_s28 }
  0x17   : > { %p1181_p8 = por %p62_p5, %p61_p3  ;;  %p41_p9 = scmp.ge.s32.totalorder %s1403_s29, 2 }
  0x18   : > { %p1188_p10 = por %p171_p7, %p55_p1  ;;  %p177_p11 = scmp.eq.s32.totalorder %s779_s26, 7 }
  0x19   : > { %s1405_s29 = smov (%p41_p9, %s1403_s29), 0  ;;  %p836_p13 = scmp.lt.s32.totalorder %s1069_s24, 8 }
  0x1a   : > { %1379 = sst [smem:[#allocation14_spill]] %s1405_s29  ;;  %p1197_p12 = por %p177_p11, %p61_p3 }
  0x1b   : > { %s43_s10 = ssub.s32 %s1065_s23, %s1405_s29  ;;  %s197_s11 = sand.u32 1, %s1041_s17  }
  0x1c   : > { %s1380_s9 = scalar_select %p1197_p12, 1, 0 }
  0x1d   : > { %s45_s12 = sor.u32 %s44_s6, %s43_s10  ;;  %s782_s13 = sshll.u32 %s197_s11, 7 }
  0x1e   : > { %1381 = sst [smem:[#allocation15_spill]] %s1380_s9  ;;  %p46_p0 = scmp.eq.s32.totalorder %s45_s12, 0 }
  0x1f   : > { %s819_s14 = sshll.u32 %s1065_s23, 5  ;;  %s201_s28 = scalar_lea.vmem [#allocation3], %s782_s13 }
  0x20   : > { %s1207_s25 = scalar_select %p46_p0, %s1041_s17, %s48_s30  }
  0x21   : > { %s206_s26 = sadd.s32 %s1061_s22, %s819_s14  ;;  %s211_s27 = sshll.u32 %s201_s28, 4  ;;  %s212_s27 = int_to_ptr.vmem [resolvable:$true] %s211_s27 }
  0x22   : > { %s785_s21 = sshll.u32 %s206_s26, 3  ;;  %s1382_s0 = sld [smem:[#allocation16_spill]] }
  0x23   : > { %p829_p1 = pnand %p836_p13, %p1169_p6  ;;  %s198_s10 = scalar_lea.sflag [#allocation4], %s197_s11 }
  0x24   : > { %s1071_s12 = smov 256   ;;  %s1072_s29 = smov 128  }
  0x25   : > { %s1073_s30 = smov 8   ;;  %p786_p2 = scmp.ge.s32.totalorder %s1069_s24, 1 }
  0x26   : > { %p252_p3 = scmp.lt.s32.totalorder %s1069_s24, 9 }
  0x28   : > { %s208_s9 = scalar_lea.hbm %s1382_s0, %s785_s21  ;;  %p253_p4 = pnand %p786_p2, %p252_p3 }
  0x29   : > { %s209_s6 = sshll.u32 %s208_s9, 4  ;;  %s1220_s28 = sand.u32 (!%p253_p4), 1, %s1037_s16   ;;  %s210_s6 = int_to_ptr.hbm [resolvable:$true] %s209_s6 }
  0x2a   : > { %831 = dma.hbm_to_vmem [thread:$0]  (!%p829_p1), %s210_s6, 2048, %s212_s27, %s198_s10, %s1071_s12, %s1072_s29, %s1073_s30  }
  0x2b   : > { %256 = sbr.rel (%p253_p4) target bundleno = 541 (0x21d), region = 36  ;;  %s787_s4 = sshll.u32 (!%p253_p4), %s1220_s28, 7 }
  0x2c   : > { %s259_s15 = scalar_lea.sflag (!%p253_p4), [#allocation4], %s1220_s28  ;;  %s1224_s21 = scalar_lea.vmem (!%p253_p4), [#allocation3], %s787_s4 }
  0x30   : > { %1024 = dma.done.wait (%p1181_p8), %s259_s15, 2048  }
  0x31   : > { %1026 = vsyncadd (%p1181_p8), %s259_s15, 4294965248  ;;  %p313_p5 = scmp.lt.s32.totalorder %s1045_s18, 1  ;;  %p315_p6 = scmp.lt.s32.totalorder %s1053_s20, 1 }
  0x32   : > { %p323_p7 = scmp.lt.s32.totalorder %s1049_s19, 1  ;;  %p795_p8 = scmp.ne.s32.totalorder %s1045_s18, 0 }
  0x33   : > { %s314_s27 = scalar_select %p313_p5, %s1045_s18, 1 }
  0x34   : > { %s316_s29 = scalar_select %p315_p6, %s1053_s20, 1 }
  0x35   : > { %s789_s5 = sshll.u32 %s314_s27, 1 }
  0x36   : > { %s318_s9 = sadd.s32 %s789_s5, %s316_s29  ;;  %s1251_s29 = scalar_lea.vmem [#allocation6], %s787_s4 }
  0x37   : > { %s790_s11 = sshll.u32 %s318_s9, 3 }
  0x38   : > { %s1238_s26 = scalar_lea.vmem %s1358_s1, %s790_s11 }
  0x39   : > { %s324_s7 = scalar_select %p323_p7, %s1049_s19, 1 }
  0x3a   : > { %341 = sbr.rel (%p795_p8) target bundleno = 80 (0x50), region = 44 }
  0x3b   : > { %s326_s6 = sadd.s32 %s789_s5, %s324_s7 }
  0x3c   : > { %s792_s10 = sshll.u32 %s326_s6, 3 }
  0x3d   : > { %s1244_s15 = scalar_lea.vmem %s1359_s2, %s792_s10  ;;  %s1249_s27 = scalar_lea.vmem %s1360_s3, %s792_s10 }
  0x3f   : > { %v342_v0 = vld [vmem:[%s1224_s21] sm:$0xff]  ;;  %v343_v1 = vld [vmem:[%s1224_s21 + $0x8] sm:$0xff]  ;;  %v344_v2 = vld [vmem:[%s1224_s21 + $0x10] sm:$0xff] }
  0x40   : > { %358 = vst [vmem:[#allocation2 + $0x30] sm:$0xff] %v342_v0  ;;  %v345_v3 = vld [vmem:[%s1224_s21 + $0x18] sm:$0xff]  ;;  %v346_v4 = vld [vmem:[%s1224_s21 + $0x20] sm:$0xff]  ;;  %v347_v5 = vld [vmem:[%s1224_s21 + $0x28] sm:$0xff] }
  0x41   : > { %359 = vst [vmem:[#allocation2] sm:$0xff] %v343_v1  ;;  %v348_v6 = vld [vmem:[%s1224_s21 + $0x30] sm:$0xff]  ;;  %v349_v7 = vld [vmem:[%s1224_s21 + $0x38] sm:$0xff]  ;;  %v350_v8 = vld [vmem:[%s1224_s21 + $0x40] sm:$0xff] }
  0x42   : > { %360 = vst [vmem:[#allocation2 + $0x58] sm:$0xff] %v344_v2  ;;  %v351_v9 = vld [vmem:[%s1224_s21 + $0x48] sm:$0xff]  ;;  %v352_v10 = vld [vmem:[%s1224_s21 + $0x50] sm:$0xff]  ;;  %v353_v11 = vld [vmem:[%s1224_s21 + $0x58] sm:$0xff] }
  0x43   : > { %361 = vst [vmem:[#allocation2 + $0x18] sm:$0xff] %v345_v3  ;;  %v354_v12 = vld [vmem:[%s1224_s21 + $0x60] sm:$0xff]  ;;  %v355_v13 = vld [vmem:[%s1224_s21 + $0x68] sm:$0xff]  ;;  %v356_v14 = vld [vmem:[%s1224_s21 + $0x70] sm:$0xff] }
  0x44   : > { %362 = vst [vmem:[#allocation2 + $0x50] sm:$0xff] %v346_v4  ;;  %v357_v15 = vld [vmem:[%s1224_s21 + $0x78] sm:$0xff] }
  0x45   : > { %363 = vst [vmem:[#allocation2 + $0x68] sm:$0xff] %v347_v5 }
  0x46   : > { %364 = vst [vmem:[#allocation2 + $0x8] sm:$0xff] %v348_v6 }
  0x47   : > { %365 = vst [vmem:[#allocation2 + $0x48] sm:$0xff] %v349_v7 }
  0x48   : > { %366 = vst [vmem:[#allocation2 + $0x40] sm:$0xff] %v350_v8 }
  0x49   : > { %367 = vst [vmem:[#allocation2 + $0x20] sm:$0xff] %v351_v9 }
  0x4a   : > { %368 = vst [vmem:[#allocation2 + $0x10] sm:$0xff] %v352_v10 }
  0x4b   : > { %369 = vst [vmem:[#allocation2 + $0x38] sm:$0xff] %v353_v11 }
  0x4c   : > { %370 = vst [vmem:[#allocation2 + $0x60] sm:$0xff] %v354_v12 }
  0x4d   : > { %371 = vst [vmem:[#allocation2 + $0x70] sm:$0xff] %v355_v13 }
  0x4e   : > { %372 = vst [vmem:[#allocation2 + $0x78] sm:$0xff] %v356_v14 }
  0x4f   : > { %373 = vst [vmem:[#allocation2 + $0x28] sm:$0xff] %v357_v15 }
  0x50 PF: > { %v374_v16 = vld [vmem:[%s1238_s26] sm:$0xff]  ;;  %vm430_vm0 = vcmask 64512   ;;  %v382_v40 = vld [vmem:[#allocation2 + $0x30] sm:$0xff]  ;;  %v384_v46 = vld [vmem:[#allocation2 + $0x58] sm:$0xff]  ;;  %p812_p9 = scmp.ne.s32.totalorder %s1045_s18, 1 }
  0x51   : > { %v375_v17 = vld [vmem:[%s1244_s15] sm:$0xff]  ;;  %398 = vxpose.xlu0.b32.start.end [1/1] (short) %v374_v16, 128  ;;  %v385_v49 = vld [vmem:[#allocation2 + $0x18] sm:$0xff]  ;;  %v386_v52 = vld [vmem:[#allocation2 + $0x50] sm:$0xff] }
  0x52   : > { %v376_v18 = vld [vmem:[%s1249_s27] sm:$0xff]  ;;  %v387_v55 = vld [vmem:[#allocation2 + $0x68] sm:$0xff]  ;;  %v392_v6 = vld [vmem:[#allocation2 + $0x10] sm:$0xff] }
  0x53   : > { %v377_v19 = vmul.f32 %v376_v18, %v375_v17  ;;  %v378_v20 = vmul.f32 0.5, %v376_v18  ;;  %v383_v43 = vld [vmem:[#allocation2] sm:$0xff]  ;;  %v388_v58 = vld [vmem:[#allocation2 + $0x8] sm:$0xff]  ;;  %v393_v9 = vld [vmem:[#allocation2 + $0x38] sm:$0xff] }
  0x54   : > { %v389_v61 = vld [vmem:[#allocation2 + $0x48] sm:$0xff]  ;;  %v390_v0 = vld [vmem:[#allocation2 + $0x40] sm:$0xff]  ;;  %v395_v15 = vld [vmem:[#allocation2 + $0x70] sm:$0xff] }
  0x55   : > { %v379_v21 = vsub.f32 %v377_v19, %v378_v20  ;;  %v391_v3 = vld [vmem:[#allocation2 + $0x20] sm:$0xff] }
  0x56   : > { %v394_v12 = vld [vmem:[#allocation2 + $0x60] sm:$0xff] }
  0x57   : > { %v380_v22 = vmul.f32 %v379_v21, %v376_v18  ;;  %v396_v18 = vld [vmem:[#allocation2 + $0x78] sm:$0xff]  ;;  %v397_v21 = vld [vmem:[#allocation2 + $0x28] sm:$0xff] }
  0x59   : > { %v381_v23 = vmul.f32 0.001, %v380_v22 }
  0x5b   : > { %494 = vmatpush.msra.mxu0 %v381_v23  ;;  %821 = vmatpush.msra.mxu1 %v381_v23 }
  0x5c   : > { %822 = vmatpush.msra.mxu2 %v381_v23  ;;  %823 = vmatpush.msra.mxu3 %v381_v23 }
  0xf5   : > { %v414_v24 = vpop.trf.xlu0 }
  0xf6   : > { %796 = vmatmul.msk.f32.vlgmr.msra.gmra.mxu0 %vm430_vm0, %v414_v24 }
  0xfd   : > { %v415_v25 = vpop.trf.xlu0 }
  0xfe   : > { %797 = vmatmul.msk.f32.gmra.mxu0 %vm430_vm0, %v415_v25 }
 0x105   : > { %v416_v26 = vpop.trf.xlu0 }
 0x106   : > { %798 = vmatmul.msk.f32.gmra.mxu0 %vm430_vm0, %v416_v26 }
 0x10d   : > { %v417_v27 = vpop.trf.xlu0 }
 0x10e   : > { %799 = vmatmul.msk.f32.gmra.mxu0 %vm430_vm0, %v417_v27 }
 0x115   : > { %v418_v28 = vpop.trf.xlu0 }
 0x116   : > { %800 = vmatmul.msk.f32.vlgmr.msra.gmra.mxu1 %vm430_vm0, %v418_v28 }
 0x11d   : > { %v419_v29 = vpop.trf.xlu0 }
 0x11e   : > { %801 = vmatmul.msk.f32.gmra.mxu1 %vm430_vm0, %v419_v29 }
 0x125   : > { %v420_v30 = vpop.trf.xlu0 }
 0x126   : > { %802 = vmatmul.msk.f32.gmra.mxu1 %vm430_vm0, %v420_v30 }
 0x12d   : > { %v421_v31 = vpop.trf.xlu0 }
 0x12e   : > { %803 = vmatmul.msk.f32.gmra.mxu1 %vm430_vm0, %v421_v31 }
 0x135   : > { %v422_v32 = vpop.trf.xlu0 }
 0x136   : > { %804 = vmatmul.msk.f32.vlgmr.msra.gmra.mxu2 %vm430_vm0, %v422_v32 }
 0x13d   : > { %v423_v33 = vpop.trf.xlu0 }
 0x13e   : > { %805 = vmatmul.msk.f32.gmra.mxu2 %vm430_vm0, %v423_v33 }
 0x145   : > { %v424_v34 = vpop.trf.xlu0 }
 0x146   : > { %806 = vmatmul.msk.f32.gmra.mxu2 %vm430_vm0, %v424_v34 }
 0x14d   : > { %v425_v35 = vpop.trf.xlu0 }
 0x14e   : > { %807 = vmatmul.msk.f32.gmra.mxu2 %vm430_vm0, %v425_v35 }
 0x155   : > { %v426_v36 = vpop.trf.xlu0 }
 0x156   : > { %808 = vmatmul.msk.f32.vlgmr.msra.gmra.mxu3 %vm430_vm0, %v426_v36 }
 0x15d   : > { %v427_v37 = vpop.trf.xlu0 }
 0x15e   : > { %809 = vmatmul.msk.f32.gmra.mxu3 %vm430_vm0, %v427_v37 }
 0x165   : > { %v428_v38 = vpop.trf.xlu0 }
 0x166   : > { %810 = vmatmul.msk.f32.gmra.mxu3 %vm430_vm0, %v428_v38 }
 0x16d   : > { %v429_v39 = vpop.trf.xlu0 }
 0x16e   : > { %811 = vmatmul.msk.f32.gmra.mxu3 %vm430_vm0, %v429_v39 }
 0x173   : > { %v496_v41 = vpop.f32.mrf.mxu0 }
 0x174   : > { %v544_v42 = vadd.f32 %v496_v41, %v382_v40 }
 0x176   : > { %560 = vst [vmem:[#allocation2 + $0x30] sm:$0xff] %v544_v42 }
 0x17b   : > { %v499_v44 = vpop.f32.mrf.mxu0 }
 0x17c   : > { %v545_v45 = vadd.f32 %v499_v44, %v383_v43 }
 0x17e   : > { %561 = vst [vmem:[#allocation2] sm:$0xff] %v545_v45 }
 0x183   : > { %v502_v47 = vpop.f32.mrf.mxu0 }
 0x184   : > { %v546_v48 = vadd.f32 %v502_v47, %v384_v46 }
 0x186   : > { %562 = vst [vmem:[#allocation2 + $0x58] sm:$0xff] %v546_v48 }
 0x18b   : > { %v505_v50 = vpop.f32.mrf.mxu0 }
 0x18c   : > { %v547_v51 = vadd.f32 %v505_v50, %v385_v49 }
 0x18e   : > { %563 = vst [vmem:[#allocation2 + $0x18] sm:$0xff] %v547_v51 }
 0x193   : > { %v508_v53 = vpop.f32.mrf.mxu1 }
 0x194   : > { %v548_v54 = vadd.f32 %v508_v53, %v386_v52 }
 0x196   : > { %564 = vst [vmem:[#allocation2 + $0x50] sm:$0xff] %v548_v54 }
 0x19b   : > { %v511_v56 = vpop.f32.mrf.mxu1 }
 0x19c   : > { %v549_v57 = vadd.f32 %v511_v56, %v387_v55 }
 0x19e   : > { %565 = vst [vmem:[#allocation2 + $0x68] sm:$0xff] %v549_v57 }
 0x1a3   : > { %v514_v59 = vpop.f32.mrf.mxu1 }
 0x1a4   : > { %v550_v60 = vadd.f32 %v514_v59, %v388_v58 }
 0x1a6   : > { %566 = vst [vmem:[#allocation2 + $0x8] sm:$0xff] %v550_v60 }
 0x1ab   : > { %v517_v62 = vpop.f32.mrf.mxu1 }
 0x1ac   : > { %v551_v63 = vadd.f32 %v517_v62, %v389_v61 }
 0x1ae   : > { %567 = vst [vmem:[#allocation2 + $0x48] sm:$0xff] %v551_v63 }
 0x1b9   : > { %v520_v1 = vpop.f32.mrf.mxu2 }
 0x1ba   : > { %v552_v2 = vadd.f32 %v520_v1, %v390_v0 }
 0x1bc   : > { %568 = vst [vmem:[#allocation2 + $0x40] sm:$0xff] %v552_v2 }
 0x1c1   : > { %v523_v4 = vpop.f32.mrf.mxu2 }
 0x1c2   : > { %v553_v5 = vadd.f32 %v523_v4, %v391_v3 }
 0x1c4   : > { %569 = vst [vmem:[#allocation2 + $0x20] sm:$0xff] %v553_v5 }
 0x1c9   : > { %v526_v7 = vpop.f32.mrf.mxu2 }
 0x1ca   : > { %v554_v8 = vadd.f32 %v526_v7, %v392_v6 }
 0x1cc   : > { %570 = vst [vmem:[#allocation2 + $0x10] sm:$0xff] %v554_v8 }
 0x1d1   : > { %v529_v10 = vpop.f32.mrf.mxu2 }
 0x1d2   : > { %v555_v11 = vadd.f32 %v529_v10, %v393_v9 }
 0x1d4   : > { %571 = vst [vmem:[#allocation2 + $0x38] sm:$0xff] %v555_v11 }
 0x1d9   : > { %v532_v13 = vpop.f32.mrf.mxu3 }
 0x1da   : > { %v556_v14 = vadd.f32 %v532_v13, %v394_v12 }
 0x1dc   : > { %572 = vst [vmem:[#allocation2 + $0x60] sm:$0xff] %v556_v14 }
 0x1e1   : > { %v535_v16 = vpop.f32.mrf.mxu3 }
 0x1e2   : > { %v557_v17 = vadd.f32 %v535_v16, %v395_v15 }
 0x1e4   : > { %573 = vst [vmem:[#allocation2 + $0x70] sm:$0xff] %v557_v17 }
 0x1e9   : > { %v538_v19 = vpop.f32.mrf.mxu3 }
 0x1ea   : > { %v558_v20 = vadd.f32 %v538_v19, %v396_v18 }
 0x1ec   : > { %574 = vst [vmem:[#allocation2 + $0x78] sm:$0xff] %v558_v20 }
 0x1f0   : > { %579 = sbr.rel (%p812_p9) target bundleno = 518 (0x206), region = 48 }
 0x1f1   : > { %v541_v22 = vpop.f32.mrf.mxu3 }
 0x1f2   : > { %v559_v23 = vadd.f32 %v541_v22, %v397_v21 }
 0x1f4   : > { %575 = vst [vmem:[#allocation2 + $0x28] sm:$0xff] %v559_v23 }
 0x1f5   : > { %v580_v24 = vld [vmem:[#allocation2 + $0x30] sm:$0xff]  ;;  %v581_v25 = vld [vmem:[#allocation2] sm:$0xff]  ;;  %v582_v26 = vld [vmem:[#allocation2 + $0x58] sm:$0xff] }
 0x1f6   : > { %596 = vst [vmem:[%s1251_s29] sm:$0xff] %v580_v24  ;;  %v583_v27 = vld [vmem:[#allocation2 + $0x18] sm:$0xff]  ;;  %v584_v28 = vld [vmem:[#allocation2 + $0x50] sm:$0xff]  ;;  %v585_v29 = vld [vmem:[#allocation2 + $0x68] sm:$0xff] }
 0x1f7   : > { %597 = vst [vmem:[%s1251_s29 + $0x8] sm:$0xff] %v581_v25  ;;  %v586_v30 = vld [vmem:[#allocation2 + $0x8] sm:$0xff]  ;;  %v588_v32 = vld [vmem:[#allocation2 + $0x40] sm:$0xff]  ;;  %v590_v34 = vld [vmem:[#allocation2 + $0x10] sm:$0xff] }
 0x1f8   : > { %598 = vst [vmem:[%s1251_s29 + $0x10] sm:$0xff] %v582_v26  ;;  %v587_v31 = vld [vmem:[#allocation2 + $0x48] sm:$0xff]  ;;  %v589_v33 = vld [vmem:[#allocation2 + $0x20] sm:$0xff]  ;;  %v591_v35 = vld [vmem:[#allocation2 + $0x38] sm:$0xff] }
 0x1f9   : > { %599 = vst [vmem:[%s1251_s29 + $0x18] sm:$0xff] %v583_v27  ;;  %v592_v36 = vld [vmem:[#allocation2 + $0x60] sm:$0xff]  ;;  %v593_v37 = vld [vmem:[#allocation2 + $0x70] sm:$0xff]  ;;  %v594_v38 = vld [vmem:[#allocation2 + $0x78] sm:$0xff] }
 0x1fa   : > { %600 = vst [vmem:[%s1251_s29 + $0x20] sm:$0xff] %v584_v28 }
 0x1fb   : > { %601 = vst [vmem:[%s1251_s29 + $0x28] sm:$0xff] %v585_v29  ;;  %v595_v39 = vld [vmem:[#allocation2 + $0x28] sm:$0xff] }
 0x1fc   : > { %602 = vst [vmem:[%s1251_s29 + $0x30] sm:$0xff] %v586_v30 }
 0x1fd   : > { %603 = vst [vmem:[%s1251_s29 + $0x38] sm:$0xff] %v587_v31 }
 0x1fe   : > { %604 = vst [vmem:[%s1251_s29 + $0x40] sm:$0xff] %v588_v32 }
 0x1ff   : > { %605 = vst [vmem:[%s1251_s29 + $0x48] sm:$0xff] %v589_v33 }
 0x200   : > { %606 = vst [vmem:[%s1251_s29 + $0x50] sm:$0xff] %v590_v34 }
 0x201   : > { %607 = vst [vmem:[%s1251_s29 + $0x58] sm:$0xff] %v591_v35 }
 0x202   : > { %608 = vst [vmem:[%s1251_s29 + $0x60] sm:$0xff] %v592_v36 }
 0x203   : > { %609 = vst [vmem:[%s1251_s29 + $0x68] sm:$0xff] %v593_v37 }
 0x204   : > { %610 = vst [vmem:[%s1251_s29 + $0x70] sm:$0xff] %v594_v38 }
 0x205   : > { %611 = vst [vmem:[%s1251_s29 + $0x78] sm:$0xff] %v595_v39 }
 0x206 PF: > { %s820_s0 = sshll.u32 %s1053_s20, 5  ;;  %s627_s23 = sshll.u32 %s1251_s29, 4  ;;  %s628_s23 = int_to_ptr.vmem [resolvable:$true] %s627_s23 }
 0x207   : > { %s624_s18 = sadd.s32 %s1049_s19, %s820_s0  ;;  %s1383_s9 = sld [smem:[#allocation17_spill]] }
 0x208   : > { %s816_s4 = sshll.u32 %s624_s18, 3  ;;  %s613_s14 = scalar_lea.sflag [#allocation5], %s1220_s28 }
 0x20d   : > { %s626_s11 = scalar_lea.hbm %s1383_s9, %s816_s4  ;;  %s975_s19 = scalar_lea.hbm %s1383_s9, 512 }
 0x20e   : > { %s629_s13 = sshll.u32 %s626_s11, 4  ;;  %s630_s13 = int_to_ptr.hbm [resolvable:$true] %s629_s13 }
 0x20f   : > { %s969_s26 = sshra.s32 %s630_s13, 4  ;;  %s970_s26 = int_to_ptr.hbm [resolvable:$true] %s969_s26 }
 0x210   : > { %s971_s7 = scalar_lea.hbm %s970_s26, 128  ;;  %p976_p1 = scmp.lt.s32.totalorder %s970_s26, %s1383_s9 }
 0x211   : > { %p972_p11 = scmp.ne.s32.totalorder %s970_s26, %s971_s7  ;;  %p977_p2 = scmp.lt.s32.totalorder %s975_s19, %s971_s7 }
 0x213   : > { %p973_p13 = pnand %p972_p11, %p1188_p10  ;;  %p978_p3 = por %p977_p2, %p976_p1 }
 0x215   : > { %p974_p0 = pneg %p973_p13 }
 0x217   : > { %p979_p4 = pnand %p978_p3, %p974_p0 }
 0x219   : > { %982 = shalt.err (!%p979_p4)
}
 0x21a   : > { %s1074_s28 = smov 128   ;;  %s1075_s30 = smov 256  }
 0x21b   : > { %s1076_s15 = smov 8  }
 0x21c   : > { %826 = dma.vmem_to_hbm [thread:$0]  (%p1188_p10), %s628_s23, 2048, %s630_s13, %s613_s14, %s1074_s28, %s1075_s30, %s1076_s15  }
 0x21d PF: > { %s1384_s27 = sld [smem:[#allocation9_spill]]  ;;  %p837_p5 = scmp.ge.s32.totalorder %s1069_s24, 2 }
 0x21f   : > { %p833_p6 = pnand %p837_p5, %p1197_p12 }
 0x221   : > { %p834_p7 = pneg %p833_p6 }
 0x223   : > { %s644_s0 = sand.u32 1, %s1384_s27  }
 0x224   : > { %s645_s18 = scalar_lea.sflag [#allocation5], %s644_s0 }
 0x225   : > { %1028 = dma.done.wait (%p834_p7), %s645_s18, 2048  }
 0x226   : > { %1030 = vsyncadd (%p834_p7), %s645_s18, 4294965248  ;;  %s20_s24 = sadd.s32 1, %s1069_s24   ;;  %s1386_s18 = sld [smem:[#allocation10_spill]] }
 0x227   : > { %p17_p8 = scmp.ge.s32.totalorder %s20_s24, 10   ;;  %s1387_s20 = sld [smem:[#allocation11_spill]] }
 0x228   : > { %s1388_s21 = sld [smem:[#allocation12_spill]]  ;;  %s1391_s15 = smov %s1037_s16 }
 0x229   : > { %s1389_s8 = sld [smem:[#allocation13_spill]]  ;;  %s1392_s16 = smov %s1041_s17 }
 0x22a   : > { %s1390_s23 = sld [smem:[#allocation14_spill]]  ;;  %s1393_s17 = smov %s1207_s25 }
 0x22b   : > { %s1394_s19 = smov %s1061_s22  ;;  %19 = sbr.rel (!%p17_p8) target bundleno = 11 (0xb), region = 98 }
 0x22f   : > { %s1395_s22 = smov %s1389_s8 }
 0x230   :  { %651 = vsyncpa [#allocation4], 1 }
 0x231   :  { %653 = vsyncpa [#allocation4 + $0x1], 1 }
 0x232   :  { %654 = vsyncpa [#allocation5], 1 }
 0x233   :  { %656 = vsyncpa [#allocation5 + $0x1], 1 }

</bundles_post_ra>
